<compile_context>
chip_gen: v5e
topology: v5e:2x2
jax: 0.10.0
libtpu: 0.0.40
codegen_flags: <defaults>
</compile_context>

<pallas_src>
import jax
import jax.numpy as jnp
from jax.experimental import pallas as pl
from jax.experimental.pallas import tpu as pltpu


# ----------------------------------------------------------------------------- encoding table
def _build_encoding(max_len: int, d_model: int) -> jnp.ndarray:
    """Mirror of PositionEmbedding.__init__ (deterministic, no checkpoint)."""
    if d_model % 2 != 0:
        # The reference PyTorch module itself shape-errors for odd d_model.
        raise ValueError("PositionEmbedding requires an even d_model.")
    pos = jnp.arange(max_len, dtype=jnp.float32)[:, None]            # (max_len, 1)
    index = jnp.arange(0, d_model, 2, dtype=jnp.float32)             # (d_model//2,)
    div = jnp.power(10000.0, index / float(d_model))                  # (d_model//2,)
    angles = pos / div                                                # (max_len, d_model//2)
    enc = jnp.zeros((max_len, d_model), dtype=jnp.float32)
    enc = enc.at[:, 0::2].set(jnp.sin(angles))
    enc = enc.at[:, 1::2].set(jnp.cos(angles))
    return enc


# ----------------------------------------------------------------------------- kernel body
def _add_pos_kernel(x_ref, enc_ref, o_ref):
    # x_ref / o_ref: (Bt, TR, lane); enc_ref: (TR, lane).
    # Trailing-dim broadcast add over the batch block -> pure VPU work, no reshapes.
    o_ref[...] = (x_ref[...] + enc_ref[...]).astype(o_ref.dtype)


# ----------------------------------------------------------------------------- tiling policy
def _vmem_capacity_bytes() -> int:
    """Physical VMEM capacity for this generation (128 MiB v5e/v6e, 64 MiB v7x)."""
    try:
        info = pltpu.get_tpu_info()
        cap = getattr(info, "vmem_capacity_bytes", None)
        if cap:
            return int(cap)
    except Exception:
        pass
    return 128 * 1024 * 1024  # conservative default (v5e/v6e)


def _tile_budget_and_vmem_limit():
    """Per-buffer tile budget and scoped-VMEM limit, derived from the chip's VMEM size.

    Working set per grid step ~= 2x x-tile + 2x out-tile + 2x enc-tile (double-buffered),
    so ~6x the per-buffer budget must fit under vmem_limit_bytes with headroom.
    """
    cap = _vmem_capacity_bytes()
    tile_budget = max(2 * 1024 * 1024, min(8 * 1024 * 1024, cap // 12))
    # v5e/v6e (128 MiB): 8 MiB tiles, 64 MiB limit.  v7x (64 MiB): ~5.3 MiB tiles, 48 MiB limit.
    vmem_limit = min((cap * 3) // 4, 64 * 1024 * 1024)
    return tile_budget, vmem_limit


def _pick_lane_dense_view(seq_len: int, d_model: int):
    """Choose a lane-dense (rows, lane) view of a contiguous (S, D) slab.

    Picks the largest multiple of 128 (up to 8192) that divides S*D so every store is a
    full-width, unmasked vst. Falls back to (S, D) if S*D is not a multiple of 128
    (correct, just masked stores if D < 128)."""
    n = seq_len * d_model
    if n % 128 == 0:
        best = 128
        lane = 256
        while lane <= min(n, 8192):
            if n % lane == 0:
                best = lane
            lane += 128
        return n // best, best
    # TODO(synk): for S*D not a multiple of 128, a flattened cdiv-tiled last dim would avoid
    # masked stores for D < 128; kept simple since it complicates the enc broadcast.
    return seq_len, d_model


def _pick_row_tile(rows: int, lane: int, itemsize: int, budget_bytes: int) -> int:
    """Sublane-aligned row tile (or the full extent) capped by the per-buffer byte budget.

    Ragged last blocks are handled by pl.cdiv + Pallas masking, so no divisor hunting."""
    sublane = {4: 8, 2: 16, 1: 32}.get(itemsize, 8)
    if rows <= sublane:
        return rows                                  # full extent -> exempt from (8,128) rule
    max_rows = max(sublane, budget_bytes // max(1, lane * itemsize))
    if rows <= max_rows:
        return rows                                  # whole slab fits in one tile
    return (max_rows // sublane) * sublane           # sublane multiple, >= sublane


# ----------------------------------------------------------------------------- forward
def position_embedding_forward(x: jnp.ndarray, encoding: jnp.ndarray,
                               donate_x: bool = False) -> jnp.ndarray:
    """x: (B, S, D); encoding: (max_len, D) float32. Returns x + encoding[:S] (in x.dtype)."""
    B, S, D = x.shape
    max_len, d_enc = encoding.shape
    if d_enc != D:
        raise ValueError(f"encoding d_model ({d_enc}) does not match x d_model ({D}).")
    if S > max_len:
        raise ValueError(f"sequence length {S} exceeds encoding max_len {max_len}.")

    # Wrapper-side glue: slice + cast the table to the activation dtype
    # (intentional precision/bandwidth trade for sub-f32 activations).
    enc = encoding[:S, :].astype(x.dtype)

    # Lane-dense flattened view (row-major contiguous reshape -> bitcast, no copy).
    rows, lane = _pick_lane_dense_view(S, D)
    itemsize = jnp.dtype(x.dtype).itemsize
    tile_budget, vmem_limit = _tile_budget_and_vmem_limit()

    tr = _pick_row_tile(rows, lane, itemsize, tile_budget)
    n_row_tiles = pl.cdiv(rows, tr)

    # Batch blocking: if the whole per-batch slab fits in one row tile, pack several batches
    # per grid step so each step moves ~tile_budget bytes (amortizes per-step overhead).
    slab_bytes = tr * lane * itemsize
    if n_row_tiles == 1:
        bt = max(1, min(B, tile_budget // max(1, slab_bytes)))
    else:
        bt = 1
    n_b_tiles = pl.cdiv(B, bt)

    x2 = x.reshape(B, rows, lane)
    enc2 = enc.reshape(rows, lane)

    if n_row_tiles == 1:
        # Single (possibly batched) row tile: one parallel axis over batch blocks
        # (keeps the megacore-sharded axis non-degenerate on v7x). enc block index is
        # constant -> fetched once and resident.
        grid = (n_b_tiles,)
        x_spec = pl.BlockSpec((bt, tr, lane), lambda b: (b, 0, 0))
        enc_spec = pl.BlockSpec((tr, lane), lambda b: (0, 0))
        out_spec = pl.BlockSpec((bt, tr, lane), lambda b: (b, 0, 0))
        dim_sem = ("parallel",)
    else:
        # Rows tiled (bt == 1). Batch varies fastest, so the enc tile's block index only
        # changes once per row tile and stays resident across the batch sweep.
        grid = (n_row_tiles, n_b_tiles)
        x_spec = pl.BlockSpec((bt, tr, lane), lambda r, b: (b, r, 0))
        enc_spec = pl.BlockSpec((tr, lane), lambda r, b: (r, 0))
        out_spec = pl.BlockSpec((bt, tr, lane), lambda r, b: (b, r, 0))
        dim_sem = ("parallel", "parallel")

    out2 = pl.pallas_call(
        _add_pos_kernel,
        out_shape=jax.ShapeDtypeStruct((B, rows, lane), x.dtype),
        grid=grid,
        in_specs=[x_spec, enc_spec],
        out_specs=out_spec,
        input_output_aliases={0: 0} if donate_x else {},
        compiler_params=pltpu.CompilerParams(
            dimension_semantics=dim_sem,
            vmem_limit_bytes=int(vmem_limit),
        ),
    )(x2, enc2)

    return out2.reshape(B, S, D)


# ----------------------------------------------------------------------------- demo / check
if __name__ == "__main__":
    # Small shapes consistent with the module's forward: (batch, seq, d_model)
    B, S, D = 2, 8, 32
    MAX_LEN = 16

    key = jax.random.PRNGKey(0)
    x = jax.random.normal(key, (B, S, D), dtype=jnp.float32)
    encoding = _build_encoding(MAX_LEN, D)

    # f32 path
    out = jax.block_until_ready(position_embedding_forward(x, encoding))
    ref = x + encoding[:S, :][None, :, :]
    assert out.shape == (B, S, D)
    assert jnp.allclose(out, ref, atol=1e-6, rtol=1e-6)

    # bf16 path (exercises the wrapper-side dtype cast of the encoding table)
    x_bf = x.astype(jnp.bfloat16)
    out_bf = jax.block_until_ready(position_embedding_forward(x_bf, encoding))
    ref_bf = x_bf + encoding[:S, :].astype(jnp.bfloat16)[None, :, :]
    assert out_bf.dtype == jnp.bfloat16
    assert jnp.allclose(out_bf.astype(jnp.float32), ref_bf.astype(jnp.float32),
                        atol=1e-2, rtol=1e-2)

    # Larger shape exercising the row-tiled (bt == 1) path with a ragged last row tile.
    B2, S2, D2 = 3, 100, 256
    x_big = jax.random.normal(jax.random.PRNGKey(1), (B2, S2, D2), dtype=jnp.float32)
    enc_big = _build_encoding(128, D2)
    out_big = jax.block_until_ready(position_embedding_forward(x_big, enc_big))
    ref_big = x_big + enc_big[:S2, :][None, :, :]
    assert jnp.allclose(out_big, ref_big, atol=1e-6, rtol=1e-6)

    print("KERNEL_OK")
</pallas_src>

<mosaic_0001>
module attributes {stable_mosaic.version = 11 : i64} {
  func.func @_add_pos_kernel(%arg0: i32, %arg1: memref<2x1x256xf32, #tpu.memory_space<vmem>>, %arg2: memref<1x256xf32, #tpu.memory_space<vmem>>, %arg3: memref<2x1x256xf32, #tpu.memory_space<vmem>>) attributes {dimension_semantics = [#tpu.dimension_semantics<parallel>], iteration_bounds = array<i64: 1>, scalar_prefetch = 0 : i64, scratch_operands = 0 : i64, tpu.core_type = #tpu.core_type<tc>, window_params = [{transform_indices = @transform_0, window_bounds = array<i64: 2, 1, 256>}, {pipeline_mode = #tpu.pipeline_mode<synchronous>, transform_indices = @transform_1, window_bounds = array<i64: 1, 256>}, {transform_indices = @transform_2, window_bounds = array<i64: 2, 1, 256>}]} {
    %c0 = arith.constant 0 : index
    %c0_0 = arith.constant 0 : index
    %c0_1 = arith.constant 0 : index
    %0 = vector.load %arg1[%c0, %c0_0, %c0_1] : memref<2x1x256xf32, #tpu.memory_space<vmem>>, vector<2x1x256xf32>
    %c0_2 = arith.constant 0 : index
    %c0_3 = arith.constant 0 : index
    %1 = vector.load %arg2[%c0_2, %c0_3] : memref<1x256xf32, #tpu.memory_space<vmem>>, vector<1x256xf32>
    %2 = vector.shape_cast %1 : vector<1x256xf32> to vector<1x1x256xf32>
    %3 = vector.broadcast %2 : vector<1x1x256xf32> to vector<2x1x256xf32>
    %4 = arith.addf %0, %3 : vector<2x1x256xf32>
    %c0_4 = arith.constant 0 : index
    %c0_5 = arith.constant 0 : index
    %c0_6 = arith.constant 0 : index
    %5 = vector.load %arg3[%c0_4, %c0_5, %c0_6] : memref<2x1x256xf32, #tpu.memory_space<vmem>>, vector<2x1x256xf32>
    tpu.vector_store %arg3[%c0_4, %c0_5, %c0_6], %4 {strides = array<i32>} : memref<2x1x256xf32, #tpu.memory_space<vmem>>, vector<2x1x256xf32>,
    return
  }
  func.func @transform_0(%arg0: i32) -> (i32, i32, i32) {
    %c0_i32 = arith.constant 0 : i32
    %c0_i32_0 = arith.constant 0 : i32
    %c0_i32_1 = arith.constant 0 : i32
    return %arg0, %c0_i32, %c0_i32_0 : i32, i32, i32
  }
  func.func @transform_1(%arg0: i32) -> (i32, i32) {
    %c0_i32 = arith.constant 0 : i32
    %c0_i32_0 = arith.constant 0 : i32
    %c0_i32_1 = arith.constant 0 : i32
    return %c0_i32, %c0_i32_0 : i32, i32
  }
  func.func @transform_2(%arg0: i32) -> (i32, i32, i32) {
    %c0_i32 = arith.constant 0 : i32
    %c0_i32_0 = arith.constant 0 : i32
    %c0_i32_1 = arith.constant 0 : i32
    return %arg0, %c0_i32, %c0_i32_0 : i32, i32, i32
  }
}

</mosaic_0001>

<bundles_post_ra>
// kernel: tpu_custom_call.1
= control target key start
LH: loop header
LB: loop body
LE: loop exit
PB: predicated region body
PF: predicated region fallthrough
CT: control target
= control target key end

     0   :  { %7 = vsyncpa [#allocation3], 0  ;;  %s185_s0 = inlined_call_operand.hbm [shape: f32[2,1,256], index: 0, kind: input, shape index: {}]   ;;  %s186_s1 = inlined_call_operand.hbm [shape: f32[1,256], index: 1, kind: input, shape index: {}]   ;;  %s187_s2 = inlined_call_operand.hbm [shape: f32[2,1,256], index: 2, kind: output, shape index: {}]  }
   0x1   :  { %8 = vsyncpa [#allocation6], 0 }
   0x2   :  { %9 = vsyncpa [#allocation4], 0  ;;  %s14_s11 = sshll.u32 %s185_s0, 4  ;;  %s156_s12 = smov [#allocation2]   ;;  %s15_s11 = int_to_ptr.hbm [resolvable:$true] %s14_s11 }
   0x3   :  { %s16_s13 = sshll.u32 %s156_s12, 4  ;;  %s28_s16 = sshll.u32 %s186_s1, 4  ;;  %s17_s13 = int_to_ptr.vmem [resolvable:$true] %s16_s13  ;;  %s29_s16 = int_to_ptr.hbm [resolvable:$true] %s28_s16 }
   0x4   :  { %s157_s17 = smov 32   ;;  %s158_s18 = smov 2  }
   0x5   :  { %22 = dma.hbm_to_vmem [thread:$0]  %s15_s11, 64, %s17_s13, [#allocation3], %s157_s17, %s157_s17, %s158_s18  }
   0x6   :  { %s159_s19 = smov [#allocation5]  }
   0x7   :  { %s30_s20 = sshll.u32 %s159_s19, 4  ;;  %s31_s20 = int_to_ptr.vmem [resolvable:$true] %s30_s20 }
   0x8   :  { %33 = dma.hbm_to_vmem [thread:$0]  %s29_s16, 32, %s31_s20, [#allocation6]  }
   0x9   :  { %150 = dma.done.wait [#allocation3], 64  }
   0xa   :  { %151 = vsyncadd [#allocation3], 4294967232 }
   0xb   :  { %152 = dma.done.wait [#allocation6], 32  }
   0xc   :  { %153 = vsyncadd [#allocation6], 4294967264  ;;  %v47_v0 = vlaneseq  ;;  %s160_s0 = smov [#allocation7]   ;;  %s59_s1 = sshll.u32 %s187_s2, 4  ;;  %v42_v1 = vld [vmem:[#allocation2] sm:$0x3]  ;;  %s60_s1 = int_to_ptr.hbm [resolvable:$true] %s59_s1 }
   0xd   :  { %s57_s21 = sshll.u32 %s160_s0, 4  ;;  %v44_v2 = vld [vmem:[#allocation5] sm:$0x3]  ;;  %v43_v3 = vld [vmem:[#allocation2 + $0x2] sm:$0x3]  ;;  %s58_s21 = int_to_ptr.vmem [resolvable:$true] %s57_s21 }
   0xe   :  { %vm49_vm0 = vcmp.lt.s32.totalorder %v47_v0, 256  ;;  %v45_v4 = vadd.f32 %v44_v2, %v42_v1  ;;  %v46_v5 = vadd.f32 %v44_v2, %v43_v3 }
  0x10   :  { %51 = vst.msk [vmem:[#allocation7] sm:$0x3] %vm49_vm0, %v45_v4 }
  0x11   :  { %52 = vst.msk [vmem:[#allocation7 + $0x2] sm:$0x3] %vm49_vm0, %v46_v5 }
  0x12   :  { %65 = dma.vmem_to_hbm [thread:$0]  %s58_s21, 64, %s60_s1, [#allocation4], %s157_s17, %s157_s17, %s158_s18  }
  0x13   :  { %154 = dma.done.wait [#allocation4], 64  }
  0x14   :  { %155 = vsyncadd [#allocation4], 4294967232 }
  0x15   :  { %70 = vsyncpa [#allocation3], 1 }
  0x16   :  { %71 = vsyncpa [#allocation6], 1 }
  0x17   :  { %72 = vsyncpa [#allocation4], 1 }

</bundles_post_ra>
